<compile_context>
chip_gen: v7x
topology: tpu7x:2x2x1
jax: 0.10.0
libtpu: 0.0.40
codegen_flags: <defaults>
</compile_context>

<pallas_src>
import jax
import jax.numpy as jnp
from jax.experimental import pallas as pl
from jax.experimental.pallas import tpu as pltpu


def _round_up(x, m):
    return ((x + m - 1) // m) * m


def _linear_kernel(x_ref, w_ref, b_ref, o_ref):
    # x: [tm, K] f32, w: [K, N] f32, b: [1, N] f32 -> o: [tm, N] f32
    acc = jnp.dot(x_ref[...], w_ref[...], preferred_element_type=jnp.float32)
    o_ref[...] = (acc + b_ref[...]).astype(o_ref.dtype)


def duration_predictor_forward(d, weight, bias, *, tm=4096):
    """DurationPredictor forward.

    d:      [B, T, K]  activations (K = inter_dim + style_dim)
    weight: [N, K]     PyTorch nn.Linear weight layout (N = max_dur)
    bias:   [N]
    returns [B, T, N]  (or [B, T] if N == 1, matching torch.squeeze(-1))
    """
    B, T, K = d.shape
    N = weight.shape[0]
    M = B * T

    # Row tile: large for real workloads to amortize per-step overhead, but
    # capped at ~half of M (8-aligned) so the grid has >= 2 steps and both
    # v7x TensorCores get work.  Floor of 8 keeps the (8, lane) tiling legal.
    tm_eff = max(8, min(tm, _round_up(pl.cdiv(M, 2), 8)))
    grid = (pl.cdiv(M, tm_eff),)

    x = d.reshape(M, K)                       # no pad, no cast: f32 straight in
    w = weight.T.astype(jnp.float32)          # [K, N]
    b = bias.astype(jnp.float32).reshape(1, N)

    out = pl.pallas_call(
        _linear_kernel,
        out_shape=jax.ShapeDtypeStruct((M, N), jnp.float32),
        grid_spec=pltpu.PrefetchScalarGridSpec(
            num_scalar_prefetch=0,
            grid=grid,
            in_specs=[
                pl.BlockSpec((tm_eff, K), lambda i: (i, 0)),  # activations: tiled over M
                pl.BlockSpec((K, N), lambda i: (0, 0)),        # weight: resident in VMEM
                pl.BlockSpec((1, N), lambda i: (0, 0)),        # bias: resident in VMEM
            ],
            out_specs=pl.BlockSpec((tm_eff, N), lambda i: (i, 0)),
        ),
        compiler_params=pltpu.CompilerParams(
            dimension_semantics=("parallel",),  # shard M across cores where available
        ),
    )(x, w, b)

    out = out.reshape(B, T, N).astype(d.dtype)
    # torch.squeeze(-1): only removes the last axis when it has size 1.
    if out.shape[-1] == 1:
        out = out[..., 0]
    return out


def init_params(key, in_dim, out_dim):
    """Deterministic xavier-uniform-like init (matches LinearNorm's nn.Linear shapes)."""
    kw, kb = jax.random.split(key)
    limit = (6.0 / (in_dim + out_dim)) ** 0.5
    weight = jax.random.uniform(kw, (out_dim, in_dim), jnp.float32, -limit, limit)
    bias = jax.random.uniform(kb, (out_dim,), jnp.float32, -0.1, 0.1)
    return weight, bias


if __name__ == "__main__":
    key = jax.random.PRNGKey(0)
    k_d, k_p = jax.random.split(key)

    # Small, consistent shapes: batch=2, seq=8, inter_dim=32, style_dim=16, max_dur=50
    B, T = 2, 8
    inter_dim, style_dim, max_dur = 32, 16, 50
    in_dim = inter_dim + style_dim

    d = jax.random.normal(k_d, (B, T, in_dim), dtype=jnp.float32)
    weight, bias = init_params(k_p, in_dim, max_dur)

    out = duration_predictor_forward(d, weight, bias)
    out = jax.block_until_ready(out)

    # Reference check in plain JAX (same math as nn.Linear, f32).
    ref = d @ weight.T + bias
    if ref.shape[-1] == 1:
        ref = ref[..., 0]
    assert out.shape == ref.shape, (out.shape, ref.shape)
    # Full f32 path now -> tight tolerance.
    assert jnp.allclose(out, ref, atol=1e-4, rtol=1e-4), float(jnp.max(jnp.abs(out - ref)))

    print("KERNEL_OK")
</pallas_src>

<mosaic_0001>
module attributes {stable_mosaic.version = 11 : i64} {
  func.func @_linear_kernel(%arg0: i32, %arg1: memref<8x48xf32, #tpu.memory_space<vmem>>, %arg2: memref<48x50xf32, #tpu.memory_space<vmem>>, %arg3: memref<1x50xf32, #tpu.memory_space<vmem>>, %arg4: memref<8x50xf32, #tpu.memory_space<vmem>>) attributes {dimension_semantics = [#tpu.dimension_semantics<parallel>], iteration_bounds = array<i64: 2>, scalar_prefetch = 0 : i64, scratch_operands = 0 : i64, tpu.core_type = #tpu.core_type<tc>, window_params = [{transform_indices = @transform_0, window_bounds = array<i64: 8, 48>}, {pipeline_mode = #tpu.pipeline_mode<synchronous>, transform_indices = @transform_1, window_bounds = array<i64: 48, 50>}, {pipeline_mode = #tpu.pipeline_mode<synchronous>, transform_indices = @transform_2, window_bounds = array<i64: 1, 50>}, {transform_indices = @transform_3, window_bounds = array<i64: 8, 50>}]} {
    %c0 = arith.constant 0 : index
    %c0_0 = arith.constant 0 : index
    %0 = vector.load %arg1[%c0, %c0_0] : memref<8x48xf32, #tpu.memory_space<vmem>>, vector<8x48xf32>
    %c0_1 = arith.constant 0 : index
    %c0_2 = arith.constant 0 : index
    %1 = vector.load %arg2[%c0_1, %c0_2] : memref<48x50xf32, #tpu.memory_space<vmem>>, vector<48x50xf32>
    %cst = arith.constant dense<0.000000e+00> : vector<8x50xf32>
    %2 = tpu.matmul %0, %1, %cst {dimension_numbers = #tpu.dot_dimension_numbers<[1], [0], [0], [1], [0, 0, 1, 1], [], []>} : vector<8x48xf32>, vector<48x50xf32>, vector<8x50xf32> -> vector<8x50xf32>
    %c0_3 = arith.constant 0 : index
    %c0_4 = arith.constant 0 : index
    %3 = vector.load %arg3[%c0_3, %c0_4] : memref<1x50xf32, #tpu.memory_space<vmem>>, vector<1x50xf32>
    %4 = vector.broadcast %3 : vector<1x50xf32> to vector<8x50xf32>
    %5 = arith.addf %2, %4 : vector<8x50xf32>
    %c0_5 = arith.constant 0 : index
    %c0_6 = arith.constant 0 : index
    %6 = vector.load %arg4[%c0_5, %c0_6] : memref<8x50xf32, #tpu.memory_space<vmem>>, vector<8x50xf32>
    tpu.vector_store %arg4[%c0_5, %c0_6], %5 {strides = array<i32>} : memref<8x50xf32, #tpu.memory_space<vmem>>, vector<8x50xf32>,
    return
  }
  func.func @transform_0(%arg0: i32) -> (i32, i32) {
    %c0_i32 = arith.constant 0 : i32
    %c0_i32_0 = arith.constant 0 : i32
    return %arg0, %c0_i32 : i32, i32
  }
  func.func @transform_1(%arg0: i32) -> (i32, i32) {
    %c0_i32 = arith.constant 0 : i32
    %c0_i32_0 = arith.constant 0 : i32
    %c0_i32_1 = arith.constant 0 : i32
    return %c0_i32, %c0_i32_0 : i32, i32
  }
  func.func @transform_2(%arg0: i32) -> (i32, i32) {
    %c0_i32 = arith.constant 0 : i32
    %c0_i32_0 = arith.constant 0 : i32
    %c0_i32_1 = arith.constant 0 : i32
    return %c0_i32, %c0_i32_0 : i32, i32
  }
  func.func @transform_3(%arg0: i32) -> (i32, i32) {
    %c0_i32 = arith.constant 0 : i32
    %c0_i32_0 = arith.constant 0 : i32
    return %arg0, %c0_i32 : i32, i32
  }
}

</mosaic_0001>

<bundles_post_ra>
// kernel: tpu_custom_call.1
= control target key start
LH: loop header
LB: loop body
LE: loop exit
PB: predicated region body
PF: predicated region fallthrough
CT: control target
= control target key end

     0   :  { %8 = vsyncpa [#allocation3], 0  ;;  %s855_s0 = inlined_call_operand.hbm [shape: f32[16,48], index: 0, kind: input, shape index: {}]   ;;  %s856_s1 = inlined_call_operand.hbm [shape: f32[48,50], index: 1, kind: input, shape index: {}]   ;;  %s857_s2 = inlined_call_operand.vmem [shape: f32[1,50], index: 2, kind: input, shape index: {}]   ;;  %s858_s3 = inlined_call_operand.hbm [shape: f32[16,50], index: 3, kind: output, shape index: {}]  }
   0x1   :  { %10 = vsyncpa [#allocation3 + $0x1], 0 }
   0x2   :  { %11 = vsyncpa [#allocation6], 0 }
   0x3   :  { %12 = vsyncpa [#allocation4], 0 }
   0x4   :  { %14 = vsyncpa [#allocation4 + $0x1], 0  ;;  %s652_s12 = smov 0   ;;  %s654_s13 = smov 0  }
   0x5   :  { %s656_s14 = smov 0   ;;  %s658_s15 = smov 0  }
   0x6 LB: > { %s673_s16 = sadd.s32 4294967295, %s622_s15   ;;  %s385_s17 = sadd.s32 4294967294, %s622_s15   ;;  %s622_s15 = sphi %s658_s15, %s878_s15   ;;  %s618_s14 = sphi %s656_s14, %s877_s14   ;;  %s614_s13 = sphi %s654_s13, %s876_s13   ;;  %s610_s12 = sphi %s652_s12, %s875_s12  }
   0x7   : > { %p40_p0 = scmp.ne.s32.totalorder %s614_s13, %s610_s12  ;;  %p859_p1 = scmp.eq.s32.totalorder %s673_s16, 0 }
   0x8   : > { %p112_p3 = scmp.eq.s32.totalorder %s385_s17, 1  ;;  %p386_p5 = scmp.ge.s32.totalorder %s622_s15, 1 }
   0x9   : > { %p682_p4 = por %p859_p1, %p40_p0  ;;  %p119_p7 = scmp.lt.s32.totalorder %s622_s15, 3 }
   0xa   : > { %p687_p6 = por %p112_p3, %p40_p0  ;;  %s624_s21 = smov [#allocation5]  }
   0xb   : > { %s862_s18 = scalar_select %p682_p4, 1, 0 }
   0xc   : > { %s863_s19 = scalar_select %p687_p6, 1, 0 }
   0xd   : > { %p692_p8 = pnand %p386_p5, %p119_p7  ;;  %s131_s22 = sshll.u32 %s624_s21, 4  ;;  %s696_s22 = int_to_ptr.vmem [resolvable:$true] %s131_s22 }
   0xe   : > { %s708_s24 = sadd.s32 1, %s622_s15   ;;  %s27_s25 = sadd.s32 1, %s618_s14 }
   0xf   : > { %s864_s20 = scalar_select %p692_p8, 1, 0 }
  0x10   : > { %p440_p9 = pneg %p692_p8  ;;  %s24_s26 = ssub.s32 %s622_s15, %s708_s24 }
  0x11   : > { %s494_s29 = scalar_lea.hbm %s856_s1, 768 }
  0x12   : > { %p703_p11 = pnand %p440_p9, %p859_p1  ;;  %p495_p12 = scmp.ne.s32.totalorder %s856_s1, %s494_s29 }
  0x13   : > { %p501_p5 = scmp.lt.u32.totalorder %s494_s29, %s856_s1 }
  0x14   : > { %p496_p13 = pneg %p703_p11 }
  0x16   : > { %p497_p0 = pnand %p496_p13, %p495_p12 }
  0x18   : > { %p498_p3 = pneg %p497_p0 }
  0x1a   : > { %p503_p7 = pnand %p501_p5, %p498_p3 }
  0x1c   : > { %506 = shalt.err (!%p503_p7)
}
  0x1d   : > { %s507_s7 = scalar_lea.vmem %s696_s22, 768  ;;  %p515_p2 = scmp.lt.s32.totalorder %s696_s22, %s696_s22 }
  0x1e   : > { %p508_p9 = scmp.ne.s32.totalorder %s696_s22, %s507_s7  ;;  %p516_p6 = scmp.lt.s32.totalorder %s507_s7, %s507_s7 }
  0x20   : > { %p510_p10 = pnand %p508_p9, %p496_p13  ;;  %p517_p4 = por %p516_p6, %p515_p2 }
  0x22   : > { %p511_p1 = pneg %p510_p10 }
  0x24   : > { %p518_p8 = pnand %p517_p4, %p511_p1 }
  0x26   : > { %521 = shalt.err (!%p518_p8)
}
  0x27   : > { %s625_s8 = smov 128   ;;  %s626_s9 = smov 8  }
  0x28   : > { %443 = dma.hbm_to_vmem [thread:$0]  (!%p703_p11), %s856_s1, 768, %s696_s22, [#allocation6], %s625_s8, %s625_s8, %s626_s9  }
  0x29   : > { %p25_p2 = scmp.eq.s32.totalorder %s24_s26, 0  ;;  %p34_p1 = scmp.ne.s32.totalorder %s618_s14, %s614_s13 }
  0x2a   : > { %p35_p4 = scmp.eq.s32.totalorder %s622_s15, 0  ;;  %p453_p6 = scmp.lt.s32.totalorder %s622_s15, 2 }
  0x2b   : > { %s739_s17 = scalar_select %p25_p2, %s618_s14, %s27_s25  }
  0x2c   : > { %p36_p8 = por %p35_p4, %p34_p1  ;;  %p866_p10 = scmp.eq.s32.totalorder %s673_s16, 1 }
  0x2d   : > { %s148_s27 = sand.u32 1, %s618_s14   ;;  %s390_s28 = sshll.u32 %s622_s15, 7 }
  0x2e   : > { %p743_p12 = por %p866_p10, %p34_p1  ;;  %s389_s29 = sshll.u32 %s148_s27, 3 }
  0x2f   : > { %s752_s4 = scalar_lea.hbm %s855_s0, %s390_s28  ;;  %s152_s22 = scalar_lea.vmem [#allocation2], %s389_s29 }
  0x30   : > { %s159_s25 = sshll.u32 %s152_s22, 4  ;;  %p754_p11 = pnand %p453_p6, %p36_p8  ;;  %s758_s25 = int_to_ptr.vmem [resolvable:$true] %s159_s25 }
  0x31   : > { %s149_s5 = scalar_lea.sflag [#allocation3], %s148_s27  ;;  %s522_s6 = scalar_lea.hbm %s752_s4, 128 }
  0x32   : > { %p523_p13 = scmp.ne.s32.totalorder %s752_s4, %s522_s6  ;;  %p524_p0 = pneg %p754_p11 }
  0x33   : > { %s527_s9 = scalar_lea.hbm %s855_s0, 256  ;;  %p528_p7 = scmp.lt.u32.totalorder %s752_s4, %s855_s0 }
  0x34   : > { %p525_p3 = pnand %p524_p0, %p523_p13  ;;  %p529_p9 = scmp.lt.u32.totalorder %s527_s9, %s522_s6 }
  0x35   : > { %p531_p1 = scmp.lt.u32.totalorder %s522_s6, %s752_s4 }
  0x36   : > { %p526_p5 = pneg %p525_p3  ;;  %p530_p2 = por %p529_p9, %p528_p7 }
  0x38   : > { %p532_p4 = por %p531_p1, %p530_p2 }
  0x3a   : > { %p533_p6 = pnand %p532_p4, %p526_p5 }
  0x3c   : > { %536 = shalt.err (!%p533_p6)
}
  0x3d   : > { %s537_s27 = scalar_lea.vmem %s758_s25, 128  ;;  %s627_s28 = smov [#allocation2]  }
  0x3e   : > { %p538_p8 = scmp.ne.s32.totalorder %s758_s25, %s537_s27  ;;  %s542_s29 = sshll.u32 %s627_s28, 4  ;;  %s543_s29 = int_to_ptr.vmem [resolvable:$false] %s542_s29 }
  0x3f   : > { %s544_s23 = scalar_lea.vmem %s543_s29, 256  ;;  %p545_p3 = scmp.lt.s32.totalorder %s758_s25, %s543_s29 }
  0x40   : > { %p540_p10 = pnand %p538_p8, %p524_p0  ;;  %p546_p7 = scmp.lt.s32.totalorder %s544_s23, %s537_s27 }
  0x42   : > { %p541_p13 = pneg %p540_p10  ;;  %p547_p9 = por %p546_p7, %p545_p3 }
  0x44   : > { %p548_p2 = pnand %p547_p9, %p541_p13 }
  0x46   : > { %551 = shalt.err (!%p548_p2)
}
  0x47   : > { %447 = dma.hbm_to_vmem [thread:$0]  (!%p754_p11), %s752_s4, 128, %s758_s25, %s149_s5  }
  0x48   : > { %p869_p5 = scmp.ne.s32.totalorder %s864_s20, 0 }
  0x49   : > { %s788_s30 = sand.u32 (!%p869_p5), 1, %s614_s13   ;;  %p870_p0 = scmp.ne.s32.totalorder (!%p869_p5), %s862_s18, 0 }
  0x4a   : > { %168 = sbr.rel (%p869_p5) target bundleno = 327 (0x147), region = 32  ;;  %s392_s22 = sshll.u32 (!%p869_p5), %s788_s30, 3 }
  0x4b   : > { %s171_s6 = scalar_lea.sflag (!%p869_p5), [#allocation3], %s788_s30  ;;  %s174_s7 = scalar_lea.vmem (!%p869_p5), [#allocation2], %s392_s22 }
  0x51   : > { %597 = dma.done.wait (%p870_p0), %s171_s6, 128  }
  0x52   : > { %599 = vsyncadd (%p870_p0), %s171_s6, 4294967168  ;;  %p871_p11 = scmp.eq.s32.totalorder %s673_s16, 0 }
  0x54   : > { %601 = dma.done.wait (%p871_p11), [#allocation6], 768   ;;  %p872_p1 = pmov %p871_p11 }
  0x55   : > { %v628_v0 = vmov 0.0|0.0   ;;  %vm629_vm0 = vmmov 0   ;;  %v630_v1 = vmov 0.0   ;;  %v202_v2 = vld [vmem:[#allocation5] sm:$0xff]  ;;  %v203_v3 = vld [vmem:[#allocation5 + $0x8] sm:$0xff]  ;;  %v204_v4 = vld [vmem:[#allocation5 + $0x10] sm:$0xff] }
  0x56   : > { %603 = vsyncadd (%p872_p1), [#allocation6], 4294966528  ;;  %423 = vmatprep.subr.bf16.mxu0 %v628_v0  ;;  %420 = vmatprep.mubr.msk.f32.mxu0 %vm629_vm0, %v630_v1  ;;  %v424_v5 = vpack.c.bf16 %v203_v3, %v202_v2  ;;  %v205_v6 = vld [vmem:[#allocation5 + $0x18] sm:$0xff]  ;;  %v206_v8 = vld [vmem:[#allocation5 + $0x20] sm:$0xff]  ;;  %vm215_vm1 = vcmask 392192   ;;  %s398_s4 = sshll.u32 %s673_s16, 7 }
  0x57   : > { %v427_v7 = vpack.c.bf16 %v205_v6, %v204_v4  ;;  %v207_v9 = vld [vmem:[#allocation5 + $0x28] sm:$0xff]  ;;  %v201_v11 = vld [vmem:[%s174_s7] sm:$0xff]  ;;  %s200_s25 = scalar_lea.vmem [#allocation7], %s392_s22  ;;  %vm289_vm2 = vcmask 408576   ;;  %s811_s9 = scalar_lea.hbm %s858_s3, %s398_s4 }
  0x58   : > { %425 = vmatpush3.bf16.msra.mxu0 %v424_v5  ;;  %v430_v10 = vpack.c.bf16 %v207_v9, %v206_v8  ;;  %v395_v12 = vld [vmem:[%s857_s2] ss:$0 sm:$0xff]  ;;  %s305_s26 = sshll.u32 %s200_s25, 4  ;;  %s292_s10 = scalar_lea.sflag [#allocation4], %s788_s30  ;;  %s813_s26 = int_to_ptr.vmem [resolvable:$true] %s305_s26 }
  0x59   : > { %426 = vmatprep.subr.bf16.mxu0 %v628_v0  ;;  %s552_s16 = scalar_lea.vmem %s813_s26, 128  ;;  %s631_s11 = smov [#allocation7]  }
  0x5a   : > { %p553_p4 = scmp.ne.s32.totalorder %s813_s26, %s552_s16  ;;  %s556_s27 = sshll.u32 %s631_s11, 4  ;;  %s557_s27 = int_to_ptr.vmem [resolvable:$false] %s556_s27 }
  0x5b   : > { %s558_s28 = scalar_lea.vmem %s557_s27, 256  ;;  %p559_p10 = scmp.lt.s32.totalorder %s813_s26, %s557_s27 }
  0x5c   : > { %428 = vmatpush3.bf16.msra.mxu0 %v427_v7  ;;  %p554_p6 = pnand %p553_p4, %p743_p12  ;;  %p560_p13 = scmp.lt.s32.totalorder %s558_s28, %s552_s16 }
  0x5d   : > { %429 = vmatprep.subr.bf16.mxu0 %v628_v0 }
  0x5e   : > { %p555_p8 = pneg %p554_p6  ;;  %p561_p3 = por %p560_p13, %p559_p10 }
  0x60   : > { %431 = vmatpush3.bf16.msra.mxu0 %v430_v10  ;;  %p562_p7 = pnand %p561_p3, %p555_p8 }
  0x63   : > { %421 = vmatmul.mubr.msk.f32.vlgmr.msra.gmra.mrb[0].mxu0 %vm215_vm1, %v201_v11 }
 0x136   : > { %v285_v13 = vpop.f32.mrb[0].mxu0 }
 0x137   : > { %v286_v14 = vadd.f32 %v395_v12, %v285_v13  ;;  %v422_v15 = vpop.f32.mrb[1].mxu0 }
 0x139   : > { %290 = vst.msk [vmem:[%s200_s25] sm:$0xff] %vm289_vm2, %v286_v14 }
 0x13a   : > { %565 = shalt.err (!%p562_p7)
}
 0x13b   : > { %s566_s29 = scalar_lea.hbm %s811_s9, 128  ;;  %s570_s22 = scalar_lea.hbm %s858_s3, 256 }
 0x13c   : > { %p567_p9 = scmp.ne.s32.totalorder %s811_s9, %s566_s29  ;;  %p571_p0 = scmp.lt.u32.totalorder %s811_s9, %s858_s3 }
 0x13d   : > { %p572_p11 = scmp.lt.u32.totalorder %s570_s22, %s566_s29  ;;  %p574_p4 = scmp.lt.u32.totalorder %s566_s29, %s811_s9 }
 0x13e   : > { %p568_p2 = pnand %p567_p9, %p743_p12 }
 0x13f   : > { %p573_p1 = por %p572_p11, %p571_p0 }
 0x140   : > { %p569_p5 = pneg %p568_p2 }
 0x141   : > { %p575_p6 = por %p574_p4, %p573_p1 }
 0x143   : > { %p576_p8 = pnand %p575_p6, %p569_p5 }
 0x145   : > { %579 = shalt.err (!%p576_p8)
}
 0x146   : > { %438 = dma.vmem_to_hbm [thread:$0]  (%p743_p12), %s813_s26, 128, %s811_s9, %s292_s10  }
 0x147 PF: > { %s317_s18 = sand.u32 1, %s610_s12   ;;  %p873_p10 = scmp.ne.s32.totalorder %s863_s19, 0 }
 0x148   : > { %p874_p13 = scmp.ge.s32.totalorder %s622_s15, 2  ;;  %s318_s20 = scalar_lea.sflag [#allocation4], %s317_s18 }
 0x14a   : > { %p449_p3 = pnand %p874_p13, %p873_p10 }
 0x14c   : > { %605 = dma.done.wait (!%p449_p3), %s318_s20, 128  }
 0x14d   : > { %607 = vsyncadd (!%p449_p3), %s318_s20, 4294967168  ;;  %p17_p7 = scmp.ge.s32.totalorder %s708_s24, 4   ;;  %s875_s12 = smov %s614_s13 }
 0x14e   : > { %s876_s13 = smov %s618_s14  ;;  %s877_s14 = smov %s739_s17 }
 0x14f   : > { %s878_s15 = smov %s708_s24  ;;  %19 = sbr.rel (!%p17_p7) target bundleno = 6 (0x6), region = 81 }
 0x156   :  { %323 = vsyncpa [#allocation3], 1 }
 0x157   :  { %325 = vsyncpa [#allocation3 + $0x1], 1 }
 0x158   :  { %326 = vsyncpa [#allocation6], 1 }
 0x159   :  { %327 = vsyncpa [#allocation4], 1 }
 0x15a   :  { %329 = vsyncpa [#allocation4 + $0x1], 1 }

</bundles_post_ra>
